<compile_context>
chip_gen: v5e
topology: v5e:2x2
jax: 0.10.0
libtpu: 0.0.40
codegen_flags: <defaults>
</compile_context>

<pallas_src>
import functools

import jax
import jax.numpy as jnp
from jax.experimental import pallas as pl
from jax.experimental.pallas import tpu as pltpu


def _round_up(x, m):
    return ((x + m - 1) // m) * m


def _conv_rows_kernel(x_ref, t_ref, o_ref, *, TM, KH):
    """One output row-block of the batch-flattened ("tall") convolution.

    x_ref: (R_pad + KH - 1, W_pad*Cin)     bf16 — all tall input rows (resident)
    t_ref: (KH, W_pad*Cin, WC_out_pad)     bf16 — block-Toeplitz weights (resident)
    o_ref: (TM, WC_out_pad)                out dtype — lane-dense output row block
    """
    # TM % 8 == 0 by construction -> aligned sublane start for the halo window.
    base = pl.multiple_of(pl.program_id(0) * TM, 8)
    # Hoisted halo window: one aligned dynamic-offset load; taps are static slices.
    xw = x_ref[pl.ds(base, TM + KH - 1), :]
    # Back-to-back dots into a single f32 accumulator (v7x MRB in-place accumulate,
    # plain pop+add on v5e/v6e).  M = TM, K = W_pad*Cin, N = WC_out_pad.
    acc = jnp.dot(xw[0:TM, :], t_ref[0], preferred_element_type=jnp.float32)
    for kh in range(1, KH):  # KH is small & static -> unrolled
        acc = acc + jnp.dot(xw[kh:kh + TM, :], t_ref[kh],
                            preferred_element_type=jnp.float32)
    o_ref[...] = acc.astype(o_ref.dtype)


def _pick_row_tile(rows):
    """Row-block size: whole problem if small, else 128 (keeps acc <= 16 vregs)."""
    if rows <= 128:
        return _round_up(rows, 8)
    return 128


def _toeplitz_weights(weight_oihw, W_pad, W_out, WC_out_pad):
    """OIHW weights -> per-kh block-Toeplitz (KH, W_pad*Cin, WC_out_pad) bf16.

    T[kh, w_in*Cin + ci, w_out*Cout + co] = weight[co, ci, kh, w_in - w_out]
    when 0 <= w_in - w_out < KW, else 0; columns are zero-padded to WC_out_pad
    (multiple of 128) so output stores are unmasked lane-dense vst.
    Done once per weight in the wrapper (tiny).
    """
    Cout, Cin, KH, KW = weight_oihw.shape
    w_hw = jnp.transpose(weight_oihw.astype(jnp.bfloat16), (2, 3, 1, 0))  # (KH,KW,Cin,Cout)
    kw_idx = jnp.arange(W_pad)[:, None] - jnp.arange(W_out)[None, :]      # (W_pad,W_out)
    valid = (kw_idx >= 0) & (kw_idx < KW)
    g = w_hw[:, jnp.clip(kw_idx, 0, KW - 1)]            # (KH, W_pad, W_out, Cin, Cout)
    g = jnp.where(valid[None, :, :, None, None], g, jnp.zeros_like(g))
    t = jnp.transpose(g, (0, 1, 3, 2, 4)).reshape(KH, W_pad * Cin, W_out * Cout)
    pad_cols = WC_out_pad - W_out * Cout
    if pad_cols:
        t = jnp.pad(t, ((0, 0), (0, 0), (0, pad_cols)))
    return t


@functools.partial(jax.jit, static_argnames=("stride", "padding", "dilation", "groups"))
def shared_conv_list_forward(x_nchw, weight_oihw, *, stride=1, padding=1,
                             dilation=1, groups=1):
    """SharedConvList.forward with task_id == 0: y = conv_s[0](x), no bias."""
    if stride != 1 or dilation != 1 or groups != 1:
        # TODO(synk): stride/dilation/groups variants not needed by the module
        # as constructed (defaults are all 1); not implemented.
        raise NotImplementedError("only stride=1, dilation=1, groups=1 supported")

    N, Cin, H, W = x_nchw.shape
    Cout, Cin_w, KH, KW = weight_oihw.shape
    assert Cin == Cin_w
    H_pad, W_pad = H + 2 * padding, W + 2 * padding
    H_out, W_out = H_pad - KH + 1, W_pad - KW + 1
    WC_in = W_pad * Cin
    WC_out = W_out * Cout
    WC_out_pad = max(128, _round_up(WC_out, 128))      # lane-dense output stores

    # Tall layout: every image contributes H_pad rows (its own zero-pad rows
    # included), so image b's valid conv outputs are tall rows
    # [b*H_pad, b*H_pad + H_out); the trailing KH-1 rows per image are junk
    # (windows straddling into the next image's top pad) and are sliced away.
    R = N * H_pad                                       # tall output rows produced
    TM = _pick_row_tile(R)
    R_pad = _round_up(R, TM)
    n_tiles = R_pad // TM
    assert TM % 8 == 0 and R_pad % TM == 0

    # Activation repack: NCHW -> bf16 -> padded NHWC -> tall (R_pad+KH-1, W_pad*Cin).
    # The bf16 cast, pad, transpose and reshape fuse into one XLA copy under jit,
    # halving the input HBM stream vs shipping f32 (review #1).
    x_pad = jnp.pad(x_nchw.astype(jnp.bfloat16),
                    ((0, 0), (0, 0), (padding, padding), (padding, padding)))
    x_tall = jnp.transpose(x_pad, (0, 2, 3, 1)).reshape(R, WC_in)
    x_tall = jnp.pad(x_tall, ((0, R_pad + KH - 1 - R), (0, 0)))  # halo + tile rows

    t_mat = _toeplitz_weights(weight_oihw, W_pad, W_out, WC_out_pad)

    out_itemsize = jnp.dtype(x_nchw.dtype).itemsize
    in_bytes = (R_pad + KH - 1) * WC_in * 2
    w_bytes = KH * WC_in * WC_out_pad * 2
    out_blk_bytes = TM * WC_out_pad * out_itemsize
    # Right-sized scoped-VMEM budget (double-buffered blocks + live vregs +
    # Mosaic internal scratch headroom); v7x-safe by construction (<< 32 MiB).
    footprint = 2 * (in_bytes + w_bytes + out_blk_bytes) + 4 * out_blk_bytes
    vmem_limit = min(32 * 1024 * 1024,
                     max(4 * 1024 * 1024, _round_up(4 * footprint, 1 << 20)))

    kernel = functools.partial(_conv_rows_kernel, TM=TM, KH=KH)

    out_tall = pl.pallas_call(
        kernel,
        out_shape=jax.ShapeDtypeStruct((R_pad, WC_out_pad), x_nchw.dtype),
        grid_spec=pltpu.PrefetchScalarGridSpec(
            num_scalar_prefetch=0,
            grid=(n_tiles,),
            in_specs=[
                # Full tall input, constant index map -> DMA'd once, VMEM-resident;
                # the kernel windows it with an aligned pl.ds (incl. KH-1 halo rows).
                pl.BlockSpec((R_pad + KH - 1, WC_in), lambda i: (0, 0)),
                # Tiny weights, constant index map -> VMEM-resident, no re-DMA.
                pl.BlockSpec((KH, WC_in, WC_out_pad), lambda i: (0, 0, 0)),
            ],
            out_specs=pl.BlockSpec((TM, WC_out_pad), lambda i: (i, 0)),
        ),
        compiler_params=pltpu.CompilerParams(
            # Row-blocks are independent -> megacore-shardable on v7x (no-op on
            # v5e/v6e's single TensorCore).
            dimension_semantics=("parallel",),
            vmem_limit_bytes=vmem_limit,
        ),
        cost_estimate=pl.CostEstimate(
            flops=2 * R_pad * KH * WC_in * WC_out_pad,
            transcendentals=0,
            bytes_accessed=in_bytes + w_bytes + R_pad * WC_out_pad * out_itemsize,
        ),
    )(x_tall, t_mat)

    # Tall rows -> (N, H_out, W_out, Cout) -> NCHW.  The junk-row / lane-pad
    # slices fuse into this single output transpose copy, kept for parity with
    # the PyTorch module's NCHW output (drop it if the consumer takes NHWC).
    out = out_tall[:R, :WC_out].reshape(N, H_pad, W_out, Cout)[:, :H_out]
    return jnp.transpose(out, (0, 3, 1, 2))


def _reference_conv(x, weight, padding):
    """XLA reference conv with the same bf16 operands / f32 accumulation."""
    return jax.lax.conv_general_dilated(
        x.astype(jnp.bfloat16), weight.astype(jnp.bfloat16),
        window_strides=(1, 1),
        padding=((padding, padding), (padding, padding)),
        dimension_numbers=("NCHW", "OIHW", "NCHW"),
        preferred_element_type=jnp.float32,
    ).astype(x.dtype)


if __name__ == "__main__":
    # Module config: SharedConvList(in_channels=4, out_channels=8, kernel_size=3,
    # stride=1, padding=1, dilation=1, groups=1, carry_all=False), task_id=0.
    N, Cin, H, W = 2, 4, 16, 16
    Cout, KH, KW, PAD = 8, 3, 3, 1

    key = jax.random.PRNGKey(0)
    kx, kw_ = jax.random.split(key)
    x = jax.random.normal(kx, (N, Cin, H, W), dtype=jnp.float32)
    weight = jax.random.normal(kw_, (Cout, Cin, KH, KW), dtype=jnp.float32) * 0.1

    out = jax.block_until_ready(shared_conv_list_forward(x, weight, padding=PAD))
    ref = _reference_conv(x, weight, PAD)
    assert out.shape == (N, Cout, H, W), out.shape
    assert jnp.allclose(out, ref, atol=2e-2, rtol=2e-2), (
        "mismatch vs reference: max |diff| = %f" % float(jnp.max(jnp.abs(out - ref))))

    # Second shape: exercises lane padding of the output (W_out*Cout = 96 -> 128)
    # and a non-power-of-two tall-row count.
    N2, C2, H2, W2, Cout2 = 1, 4, 48, 12, 8
    kx2, kw2 = jax.random.split(jax.random.PRNGKey(1))
    x2 = jax.random.normal(kx2, (N2, C2, H2, W2), dtype=jnp.float32)
    w2 = jax.random.normal(kw2, (Cout2, C2, KH, KW), dtype=jnp.float32) * 0.1
    out2 = jax.block_until_ready(shared_conv_list_forward(x2, w2, padding=PAD))
    ref2 = _reference_conv(x2, w2, PAD)
    assert out2.shape == (N2, Cout2, H2, W2), out2.shape
    assert jnp.allclose(out2, ref2, atol=2e-2, rtol=2e-2), (
        "mismatch vs reference (lane-pad): max |diff| = %f"
        % float(jnp.max(jnp.abs(out2 - ref2))))

    # Third shape: R = N*H_pad = 132 > 128 -> multiple row-blocks (grid=(2,)),
    # exercising the halo seam between blocks and the junk-row padding tail.
    N3, C3, H3, W3, Cout3 = 2, 4, 64, 16, 8
    kx3, kw3 = jax.random.split(jax.random.PRNGKey(2))
    x3 = jax.random.normal(kx3, (N3, C3, H3, W3), dtype=jnp.float32)
    w3 = jax.random.normal(kw3, (Cout3, C3, KH, KW), dtype=jnp.float32) * 0.1
    out3 = jax.block_until_ready(shared_conv_list_forward(x3, w3, padding=PAD))
    ref3 = _reference_conv(x3, w3, PAD)
    assert out3.shape == (N3, Cout3, H3, W3), out3.shape
    assert jnp.allclose(out3, ref3, atol=2e-2, rtol=2e-2), (
        "mismatch vs reference (tiled): max |diff| = %f"
        % float(jnp.max(jnp.abs(out3 - ref3))))

    print("KERNEL_OK")
</pallas_src>

<mosaic_0001>
module attributes {stable_mosaic.version = 11 : i64} {
  func.func @_conv_rows_kernel(%arg0: i32, %arg1: memref<42x72xbf16, #tpu.memory_space<vmem>>, %arg2: memref<3x72x128xbf16, #tpu.memory_space<vmem>>, %arg3: memref<40x128xf32, #tpu.memory_space<vmem>>) attributes {dimension_semantics = [#tpu.dimension_semantics<parallel>], iteration_bounds = array<i64: 1>, scalar_prefetch = 0 : i64, scratch_operands = 0 : i64, tpu.core_type = #tpu.core_type<tc>, window_params = [{pipeline_mode = #tpu.pipeline_mode<synchronous>, transform_indices = @transform_0, window_bounds = array<i64: 42, 72>}, {pipeline_mode = #tpu.pipeline_mode<synchronous>, transform_indices = @transform_1, window_bounds = array<i64: 3, 72, 128>}, {transform_indices = @transform_2, window_bounds = array<i64: 40, 128>}]} {
    %c40_i32 = arith.constant 40 : i32
    %0 = arith.muli %arg0, %c40_i32 : i32
    %1 = tpu.assume_multiple %0, 8 : i32
    %2 = arith.index_cast %1 : i32 to index
    %c0 = arith.constant 0 : index
    %3 = vector.load %arg1[%2, %c0] : memref<42x72xbf16, #tpu.memory_space<vmem>>, vector<42x72xbf16>
    %4 = vector.extract_strided_slice %3 {offsets = [0, 0], sizes = [40, 72], strides = [1, 1]} : vector<42x72xbf16> to vector<40x72xbf16>
    %c0_0 = arith.constant 0 : index
    %c0_1 = arith.constant 0 : index
    %c0_2 = arith.constant 0 : index
    %5 = vector.load %arg2[%c0_0, %c0_1, %c0_2] : memref<3x72x128xbf16, #tpu.memory_space<vmem>>, vector<1x72x128xbf16>
    %6 = vector.shape_cast %5 : vector<1x72x128xbf16> to vector<72x128xbf16>
    %cst = arith.constant dense<0.000000e+00> : vector<40x128xf32>
    %7 = tpu.matmul %4, %6, %cst {dimension_numbers = #tpu.dot_dimension_numbers<[1], [0], [0], [1], [0, 0, 1, 1], [], []>} : vector<40x72xbf16>, vector<72x128xbf16>, vector<40x128xf32> -> vector<40x128xf32>
    %8 = vector.extract_strided_slice %3 {offsets = [1, 0], sizes = [40, 72], strides = [1, 1]} : vector<42x72xbf16> to vector<40x72xbf16>
    %c1 = arith.constant 1 : index
    %c0_3 = arith.constant 0 : index
    %c0_4 = arith.constant 0 : index
    %9 = vector.load %arg2[%c1, %c0_3, %c0_4] : memref<3x72x128xbf16, #tpu.memory_space<vmem>>, vector<1x72x128xbf16>
    %10 = vector.shape_cast %9 : vector<1x72x128xbf16> to vector<72x128xbf16>
    %cst_5 = arith.constant dense<0.000000e+00> : vector<40x128xf32>
    %11 = tpu.matmul %8, %10, %cst_5 {dimension_numbers = #tpu.dot_dimension_numbers<[1], [0], [0], [1], [0, 0, 1, 1], [], []>} : vector<40x72xbf16>, vector<72x128xbf16>, vector<40x128xf32> -> vector<40x128xf32>
    %12 = arith.addf %7, %11 : vector<40x128xf32>
    %13 = vector.extract_strided_slice %3 {offsets = [2, 0], sizes = [40, 72], strides = [1, 1]} : vector<42x72xbf16> to vector<40x72xbf16>
    %c2 = arith.constant 2 : index
    %c0_6 = arith.constant 0 : index
    %c0_7 = arith.constant 0 : index
    %14 = vector.load %arg2[%c2, %c0_6, %c0_7] : memref<3x72x128xbf16, #tpu.memory_space<vmem>>, vector<1x72x128xbf16>
    %15 = vector.shape_cast %14 : vector<1x72x128xbf16> to vector<72x128xbf16>
    %cst_8 = arith.constant dense<0.000000e+00> : vector<40x128xf32>
    %16 = tpu.matmul %13, %15, %cst_8 {dimension_numbers = #tpu.dot_dimension_numbers<[1], [0], [0], [1], [0, 0, 1, 1], [], []>} : vector<40x72xbf16>, vector<72x128xbf16>, vector<40x128xf32> -> vector<40x128xf32>
    %17 = arith.addf %12, %16 : vector<40x128xf32>
    %c0_9 = arith.constant 0 : index
    %c0_10 = arith.constant 0 : index
    %18 = vector.load %arg3[%c0_9, %c0_10] : memref<40x128xf32, #tpu.memory_space<vmem>>, vector<40x128xf32>
    tpu.vector_store %arg3[%c0_9, %c0_10], %17 {strides = array<i32>} : memref<40x128xf32, #tpu.memory_space<vmem>>, vector<40x128xf32>,
    return
  }
  func.func @transform_0(%arg0: i32) -> (i32, i32) {
    %c0_i32 = arith.constant 0 : i32
    %c0_i32_0 = arith.constant 0 : i32
    %c0_i32_1 = arith.constant 0 : i32
    return %c0_i32, %c0_i32_0 : i32, i32
  }
  func.func @transform_1(%arg0: i32) -> (i32, i32, i32) {
    %c0_i32 = arith.constant 0 : i32
    %c0_i32_0 = arith.constant 0 : i32
    %c0_i32_1 = arith.constant 0 : i32
    %c0_i32_2 = arith.constant 0 : i32
    return %c0_i32, %c0_i32_0, %c0_i32_1 : i32, i32, i32
  }
  func.func @transform_2(%arg0: i32) -> (i32, i32) {
    %c0_i32 = arith.constant 0 : i32
    %c0_i32_0 = arith.constant 0 : i32
    return %arg0, %c0_i32 : i32, i32
  }
}

</mosaic_0001>

<bundles_post_ra>
// kernel: shared_conv_list_forward.1
= control target key start
LH: loop header
LB: loop body
LE: loop exit
PB: predicated region body
PF: predicated region fallthrough
CT: control target
= control target key end

     0   :  { %vm118_vm0 = vcmask 1043456   ;;  %vm57_vm1 = vsmask.f32 7424  ;;  %vm216_vm2 = vcmask 1046528   ;;  %vm108_vm3 = vcmask 588800   ;;  %s502_s1 = inlined_call_operand.vmem [shape: bf16[3,72,128], index: 1, kind: input, shape index: {}]   ;;  %s503_s0 = inlined_call_operand.vmem [shape: bf16[42,72], index: 0, kind: input, shape index: {}]   ;;  %s504_s2 = inlined_call_operand.vmem [shape: f32[40,128], index: 2, kind: output, shape index: {}]  }
   0x1   :  { %v308_v0 = vld [vmem:[%s502_s1 + $0x44] sm:$0xf]  ;;  %v31_v1 = vld [vmem:[%s502_s1 + $0x20] sm:$0xf]  ;;  %v363_v2 = vld [vmem:[%s502_s1 + $0x68] sm:$0xf] }
   0x2   :  { %v98_v3 = vunpack.c.l.b16 %v308_v0  ;;  %v163_v4 = vunpack.c.l.b16 %v31_v1  ;;  %v239_v5 = vunpack.c.l.b16 %v363_v2  ;;  %v392_v12 = vld [vmem:[%s502_s1 + $0x3c] sm:$0xff]  ;;  %v21_v15 = vld [vmem:[%s503_s0 + $0x10] sm:$0xf]  ;;  %v22_v16 = vld [vmem:[%s503_s0 + $0x14] sm:$0x1] }
   0x3   :  { %v388_v13 = vld [vmem:[%s502_s1 + $0x18] sm:$0xff]  ;;  %v383_v14 = vld [vmem:[%s503_s0] sm:$0xff]  ;;  %v52_v18 = vunpack.c.l.b16 %v21_v15  ;;  %v53_v19 = vunpack.c.l.b16 %v22_v16  ;;  %v384_v20 = vld [vmem:[%s503_s0 + $0x8] sm:$0xff] }
   0x4   :  { %v103_v6 = vpack.c.b16 %v98_v3, %v98_v3  ;;  %v168_v7 = vpack.c.b16 %v163_v4, %v163_v4  ;;  %v244_v8 = vpack.c.b16 %v239_v5, %v239_v5  ;;  %v396_v17 = vld [vmem:[%s502_s1 + $0x60] sm:$0xff]  ;;  %v391_v21 = vld [vmem:[%s502_s1 + $0x34] sm:$0xff]  ;;  %v61_v23 = vshll.u32 %v383_v14, 16  ;;  %v390_v27 = vld [vmem:[%s502_s1 + $0x2c] sm:$0xff] }
   0x5   :  { %v387_v22 = vld [vmem:[%s502_s1 + $0x10] sm:$0xff]  ;;  %v395_v24 = vld [vmem:[%s502_s1 + $0x58] sm:$0xff]  ;;  %v56_v25 = vpack.c.b16 %v53_v19, %v52_v18  ;;  %v66_v26 = vshll.u32 %v384_v20, 16  ;;  %v386_v28 = vld [vmem:[%s502_s1 + $0x8] sm:$0xff]  ;;  %v59_v29 = vshrl.u32 %v383_v14, 16  ;;  %v70_v32 = vshrl.u32 %v384_v20, 16 }
   0x6   :  { %v120_v9 = vsel %vm118_vm0, %v103_v6, 0  ;;  %v181_v10 = vsel %vm118_vm0, %v168_v7, 0  ;;  %v259_v11 = vsel %vm118_vm0, %v244_v8, 0  ;;  %v63_v30 = vrot.slane %v61_v23, 1  ;;  %v394_v31 = vld [vmem:[%s502_s1 + $0x50] sm:$0xff]  ;;  %v389_v35 = vld [vmem:[%s502_s1 + $0x24] sm:$0xff] }
   0x7   :  { %125 = vmatpush.bf16.msra.mxu0 %v120_v9  ;;  %186 = vmatpush.bf16.msra.mxu1 %v181_v10  ;;  %v74_v33 = vshll.u32 %v56_v25, 16  ;;  %v68_v34 = vrot.slane %v66_v26, 1  ;;  %v385_v36 = vld [vmem:[%s502_s1] sm:$0xff]  ;;  %v393_v38 = vld [vmem:[%s502_s1 + $0x48] sm:$0xff]  ;;  %v217_v39 = vrot.slane %v383_v14, 1  ;;  %v218_v40 = vrot.slane %v384_v20, 1 }
   0x8   :  { %264 = vmatpush.bf16.msra.mxu2 %v259_v11  ;;  %397 = vmatpush.bf16.msra.mxu3 %v120_v9  ;;  %v64_v37 = vor.u32 %v63_v30, %v59_v29  ;;  %v78_v46 = vshrl.u32 %v56_v25, 16  ;;  %v220_v47 = vrot.slane %v56_v25, 1  ;;  %v145_v50 = vpack.c.b16 %v52_v18, %v52_v18 }
   0x9   :  { %v72_v41 = vor.u32 %v70_v32, %v68_v34  ;;  %v76_v42 = vrot.slane %v74_v33, 1  ;;  %v219_v44 = vsel %vm216_vm2, %v217_v39, %v218_v40 }
   0xa   :  { %v69_v43 = vsel %vm57_vm1, %v64_v37, %v68_v34  ;;  %v221_v49 = vsel %vm216_vm2, %v218_v40, %v220_v47 }
   0xb   :  { %126 = vmatpush.bf16.msra.mxu0 %v392_v12  ;;  %187 = vmatpush.bf16.msra.mxu1 %v388_v13  ;;  %v77_v45 = vsel %vm57_vm1, %v72_v41, %v76_v42  ;;  %v80_v48 = vor.u32 %v78_v46, %v76_v42 }
   0xc   :  { %265 = vmatpush.bf16.msra.mxu2 %v396_v17  ;;  %398 = vmatpush.bf16.msra.mxu3 %v392_v12 }
   0xf   :  { %127 = vmatpush.bf16.msra.mxu0 %v391_v21  ;;  %188 = vmatpush.bf16.msra.mxu1 %v387_v22 }
  0x10   :  { %266 = vmatpush.bf16.msra.mxu2 %v395_v24  ;;  %399 = vmatpush.bf16.msra.mxu3 %v391_v21 }
  0x13   :  { %128 = vmatpush.bf16.msra.mxu0 %v390_v27  ;;  %189 = vmatpush.bf16.msra.mxu1 %v386_v28 }
  0x14   :  { %267 = vmatpush.bf16.msra.mxu2 %v394_v31  ;;  %400 = vmatpush.bf16.msra.mxu3 %v390_v27 }
  0x17   :  { %129 = vmatpush.bf16.msra.mxu0 %v389_v35  ;;  %190 = vmatpush.bf16.msra.mxu1 %v385_v36 }
  0x18   :  { %268 = vmatpush.bf16.msra.mxu2 %v393_v38  ;;  %401 = vmatpush.bf16.msra.mxu3 %v389_v35 }
  0x1a   :  { %333 = vmatmul.msk.bf16.vlgmr.msra.gmra.mxu0 %vm108_vm3, %v69_v43  ;;  %352 = vmatmul.msk.bf16.vlgmr.msra.gmra.mxu1 %vm108_vm3, %v383_v14 }
  0x1b   :  { %380 = vmatmul.msk.bf16.vlgmr.msra.gmra.mxu2 %vm108_vm3, %v219_v44  ;;  %334 = vmatmul.msk.bf16.vlgmr.msra.gmra.mxu3 %vm108_vm3, %v77_v45 }
  0x2a   :  { %353 = vmatmul.msk.bf16.gmra.mxu1 %vm108_vm3, %v384_v20 }
  0x2b   :  { %381 = vmatmul.msk.bf16.gmra.mxu2 %vm108_vm3, %v221_v49  ;;  %335 = vmatmul.msk.bf16.gmra.mxu3 %vm108_vm3, %v80_v48 }
  0x3a   :  { %354 = vmatmul.msk.bf16.gmra.mxu1 %vm108_vm3, %v145_v50 }
  0x3b   :  { %382 = vmatmul.msk.bf16.gmra.mxu2 %vm108_vm3, %v220_v47 }
  0x97   :  { %v192_v51 = vpop.f32.mrf.mxu1  ;;  %v131_v52 = vpop.f32.mrf.mxu0 }
  0x98   :  { %v193_v53 = vadd.f32 %v192_v51, %v131_v52 }
  0x9e   :  { %v270_v54 = vpop.f32.mrf.mxu2  ;;  %v136_v55 = vpop.f32.mrf.mxu3 }
  0x9f   :  { %v284_v56 = vadd.f32 %v270_v54, %v193_v53  ;;  %v194_v57 = vpop.f32.mrf.mxu1  ;;  %v133_v58 = vpop.f32.mrf.mxu0 }
  0xa0   :  { %v195_v59 = vadd.f32 %v194_v57, %v133_v58 }
  0xa1   :  { %289 = vst [vmem:[%s504_s2] sm:$0xff] %v284_v56 }
  0xa6   :  { %v272_v60 = vpop.f32.mrf.mxu2  ;;  %v138_v61 = vpop.f32.mrf.mxu3 }
  0xa7   :  { %v285_v62 = vadd.f32 %v272_v60, %v195_v59  ;;  %v197_v63 = vpop.f32.mrf.mxu1 }
  0xa8   :  { %v198_v0 = vadd.f32 %v197_v63, %v136_v55 }
  0xa9   :  { %290 = vst [vmem:[%s504_s2 + $0x8] sm:$0xff] %v285_v62 }
  0xae   :  { %v275_v1 = vpop.f32.mrf.mxu2  ;;  %v141_v2 = vpop.f32.mrf.mxu3 }
  0xaf   :  { %v286_v3 = vadd.f32 %v275_v1, %v198_v0  ;;  %v199_v4 = vpop.f32.mrf.mxu1 }
  0xb0   :  { %v200_v5 = vadd.f32 %v199_v4, %v138_v61 }
  0xb1   :  { %291 = vst [vmem:[%s504_s2 + $0x10] sm:$0xff] %v286_v3 }
  0xb6   :  { %v277_v6 = vpop.f32.mrf.mxu2  ;;  %v143_v7 = vpop.f32.mrf.mxu3 }
  0xb7   :  { %v287_v8 = vadd.f32 %v277_v6, %v200_v5  ;;  %v202_v9 = vpop.f32.mrf.mxu1 }
  0xb8   :  { %v203_v10 = vadd.f32 %v202_v9, %v141_v2 }
  0xb9   :  { %292 = vst [vmem:[%s504_s2 + $0x18] sm:$0xff] %v287_v8 }
  0xbe   :  { %v280_v11 = vpop.f32.mrf.mxu2 }
  0xbf   :  { %v288_v12 = vadd.f32 %v280_v11, %v203_v10  ;;  %v204_v13 = vpop.f32.mrf.mxu1 }
  0xc1   :  { %293 = vst [vmem:[%s504_s2 + $0x20] sm:$0xff] %v288_v12 }
  0xc6   :  { %v282_v14 = vpop.f32.mrf.mxu2 }

</bundles_post_ra>
